<compile_context>
chip_gen: v7x
topology: tpu7x:2x2x1
jax: 0.10.0
libtpu: 0.0.40
codegen_flags: <defaults>
</compile_context>

<pallas_src>
import functools

import jax
import jax.numpy as jnp
from jax.experimental import pallas as pl
from jax.experimental.pallas import tpu as pltpu

FEAT = 32                       # backbone feature dim of the stand-in
NP = 128                        # lane-dense padded output-channel width
TILE_TARGET = 512               # target stem rows per tile
VMEM_LIMIT = 32 * 1024 * 1024   # safe scoped-VMEM budget on v5e/v6e/v7x


def _round_up(n, m):
    return ((n + m - 1) // m) * m


# ------------------------------ stem conv kernel ---------------------------- #

def _stem_kernel(p_ref, w_ref, b_ref, o_ref):
    # fused: (im2col patch tile, bf16) @ (BN-folded weight, bf16) -> +shift -> ReLU
    acc = jnp.dot(p_ref[...], w_ref[...], preferred_element_type=jnp.float32)
    o_ref[...] = jnp.maximum(acc + b_ref[...], 0.0).astype(o_ref.dtype)


def stem_conv(patches, w_folded, shift):
    """Tiled stem conv (im2col matmul, K=32) + folded-BN shift + ReLU -> bf16."""
    M, K = patches.shape
    tm = min(TILE_TARGET, _round_up(M, 128))          # tiles are multiples of 128
    m_pad = _round_up(M, tm)
    p = jnp.pad(patches, ((0, m_pad - M), (0, 0)))
    out = pl.pallas_call(
        _stem_kernel,
        out_shape=jax.ShapeDtypeStruct((m_pad, NP), jnp.bfloat16),
        grid=(m_pad // tm,),
        in_specs=[
            pl.BlockSpec((tm, K), lambda i: (i, 0)),   # patch row tile
            pl.BlockSpec((K, NP), lambda i: (0, 0)),   # weights (resident)
            pl.BlockSpec((1, NP), lambda i: (0, 0)),   # folded-BN shift
        ],
        out_specs=pl.BlockSpec((tm, NP), lambda i: (i, 0)),
        compiler_params=pltpu.CompilerParams(
            dimension_semantics=("parallel",), vmem_limit_bytes=VMEM_LIMIT),
    )(p, w_folded, shift)
    return out[:M]        # padded rows hold ReLU(shift) garbage; never consumed


# ---------------- fused residual block + global-avg-pool kernel ------------- #

def _block_gap_kernel(a_ref, m_ref, w1_ref, b1_ref, w2_ref, b2_ref, e_ref,
                      o_ref, *, offsets, inv_hw):
    """conv1(3x3)+BN+ReLU -> conv2(3x3)+BN -> +skip -> ReLU -> GAP, per batch.

    a_ref  : (1, S, C)  bf16  zero-padded (pad=1) spatial frame, row-flattened
    m_ref  : (S, 1)     f32   1.0 at valid interior rows, 0.0 elsewhere
    w*_ref : (9, C, NP) bf16  per-tap BN-folded conv weights (tap = di*3 + dj)
    b*_ref : (1, NP)    f32   folded BN shifts
    e_ref  : (C, NP)    bf16  identity (residual skip as an extra matmul)
    o_ref  : (1, 8, NP) f32   pooled features, broadcast over 8 sublanes
    """
    a = a_ref[0]                                    # (S, C) bf16
    s = a.shape[0]
    c = a.shape[1]
    mask = m_ref[...]                               # (S, 1) f32

    def shifted(x, off):
        # conv tap rows: shifted[p] = x[p + off]   (jnp.roll semantics)
        return x if off == 0 else pltpu.roll(x, (-off) % s, axis=0)

    # conv1: 9 shifted matmuls (K = C real channels only) + folded BN + ReLU
    acc1 = jnp.dot(shifted(a, offsets[0]), w1_ref[0],
                   preferred_element_type=jnp.float32)
    for t in range(1, len(offsets)):
        acc1 = acc1 + jnp.dot(shifted(a, offsets[t]), w1_ref[t],
                              preferred_element_type=jnp.float32)
    h = jnp.maximum(acc1 + b1_ref[...], 0.0) * mask           # (S, NP) f32
    h_c = h[:, :c].astype(jnp.bfloat16)                       # real channels only

    # conv2 + folded BN + residual skip (identity matmul on a) + ReLU
    acc2 = jnp.dot(a, e_ref[...], preferred_element_type=jnp.float32)
    for t in range(len(offsets)):
        acc2 = acc2 + jnp.dot(shifted(h_c, offsets[t]), w2_ref[t],
                              preferred_element_type=jnp.float32)
    out = jnp.maximum(acc2 + b2_ref[...], 0.0) * mask         # (S, NP) f32

    # global average pool over valid spatial positions (padding rows are zero)
    pooled = jnp.sum(out, axis=0, keepdims=True) * inv_hw     # (1, NP)
    o_ref[...] = jnp.broadcast_to(pooled.reshape(1, 1, NP), o_ref.shape)


def residual_block_gap(a_flat, mask, w1, b1, w2, b2, eye, offsets, hw_valid):
    B, S, C = a_flat.shape
    out = pl.pallas_call(
        functools.partial(_block_gap_kernel, offsets=tuple(offsets),
                          inv_hw=1.0 / float(hw_valid)),
        out_shape=jax.ShapeDtypeStruct((B, 8, NP), jnp.float32),
        grid=(B,),
        in_specs=[
            pl.BlockSpec((1, S, C), lambda b: (b, 0, 0)),    # activation frame
            pl.BlockSpec((S, 1), lambda b: (0, 0)),          # interior mask
            pl.BlockSpec((9, C, NP), lambda b: (0, 0, 0)),   # conv1 weights
            pl.BlockSpec((1, NP), lambda b: (0, 0)),         # conv1 shift
            pl.BlockSpec((9, C, NP), lambda b: (0, 0, 0)),   # conv2 weights
            pl.BlockSpec((1, NP), lambda b: (0, 0)),         # conv2 shift
            pl.BlockSpec((C, NP), lambda b: (0, 0)),         # identity (skip)
        ],
        out_specs=pl.BlockSpec((1, 8, NP), lambda b: (b, 0, 0)),
        compiler_params=pltpu.CompilerParams(
            dimension_semantics=("parallel",),               # v7x: both TCs busy
            vmem_limit_bytes=VMEM_LIMIT),
    )(a_flat, mask, w1, b1, w2, b2, eye)
    return out[:, 0, :]


# --------------------------------- glue ------------------------------------- #

def im2col(x_nhwc, k, stride, pad):
    """kxk patches (NHWC) -> (B*Ho*Wo, k*k*Cin). Only used for the tiny stem."""
    x = jnp.pad(x_nhwc, ((0, 0), (pad, pad), (pad, pad), (0, 0)))
    B, H, W, C = x.shape
    Ho = (H - k) // stride + 1
    Wo = (W - k) // stride + 1
    cols = []
    for di in range(k):
        for dj in range(k):
            cols.append(x[:, di:di + stride * Ho:stride,
                          dj:dj + stride * Wo:stride, :])
    p = jnp.concatenate(cols, axis=-1)   # column index = (di*k + dj)*C + c
    return p.reshape(B * Ho * Wo, k * k * C), (B, Ho, Wo)


def _fold_stem_weight(w, scale, k_pad):
    """BN-scale folded stem weight -> (k_pad, NP) bf16, im2col row ordering."""
    kh, kw, cin, cout = w.shape
    wf = w * scale.reshape(1, 1, 1, cout)
    wf = jnp.pad(wf, ((0, 0), (0, 0), (0, 0), (0, NP - cout)))
    wf = wf.reshape(kh * kw * cin, NP)
    wf = jnp.pad(wf, ((0, k_pad - kh * kw * cin), (0, 0)))
    return wf.astype(jnp.bfloat16)


def _fold_block_weight(w, scale):
    """BN-scale folded 3x3 weight -> per-tap stack (9, cin, NP) bf16."""
    kh, kw, cin, cout = w.shape
    wf = w * scale.reshape(1, 1, 1, cout)
    wf = jnp.pad(wf, ((0, 0), (0, 0), (0, 0), (0, NP - cout)))
    return wf.reshape(kh * kw, cin, NP).astype(jnp.bfloat16)


def _pad_shift(shift):
    return jnp.pad(shift.reshape(1, -1),
                   ((0, 0), (0, NP - shift.shape[0]))).astype(jnp.float32)


# ------------------------------- parameters --------------------------------- #

def init_params(key):
    ks = jax.random.split(key, 6)

    def conv_w(k_, kh, kw, cin, cout):
        fan_in = kh * kw * cin
        return (jax.random.normal(k_, (kh, kw, cin, cout), jnp.float32)
                / jnp.sqrt(jnp.float32(fan_in)))

    def bn(k_, c, eps=1e-5):
        gk, bk, mk, vk = jax.random.split(k_, 4)
        gamma = 1.0 + 0.1 * jax.random.normal(gk, (c,), jnp.float32)
        beta = 0.1 * jax.random.normal(bk, (c,), jnp.float32)
        mean = 0.1 * jax.random.normal(mk, (c,), jnp.float32)
        var = jnp.abs(jax.random.normal(vk, (c,), jnp.float32)) + 1.0
        scale = gamma / jnp.sqrt(var + eps)      # inference-mode folded BN
        shift = beta - mean * scale
        return scale, shift

    return {
        "stem_w": conv_w(ks[0], 3, 3, 3, FEAT),
        "stem_bn": bn(ks[1], FEAT),
        "b1_w": conv_w(ks[2], 3, 3, FEAT, FEAT),
        "b1_bn": bn(ks[3], FEAT),
        "b2_w": conv_w(ks[4], 3, 3, FEAT, FEAT),
        "b2_bn": bn(ks[5], FEAT),
    }


# -------------------------------- forward ----------------------------------- #

def image_encoder_forward(x_nchw, params):
    """ImageEncoder.forward: backbone(x) with global_pool='avg' -> (B, FEAT)."""
    x = jnp.transpose(x_nchw, (0, 2, 3, 1)).astype(jnp.float32)   # NCHW -> NHWC

    # ---- stem: conv3x3 stride 2 pad 1 + folded BN + ReLU -------------------- #
    scale0, shift0 = params["stem_bn"]
    p0, (B, Ho, Wo) = im2col(x, k=3, stride=2, pad=1)             # (M, 27)
    k0 = _round_up(p0.shape[1], 32)                               # 27 -> 32
    p0 = jnp.pad(p0, ((0, 0), (0, k0 - p0.shape[1]))).astype(jnp.bfloat16)
    w0 = _fold_stem_weight(params["stem_w"], scale0, k0)          # (32, NP) bf16
    y = stem_conv(p0, w0, _pad_shift(shift0))                     # (M, NP) bf16
    y = y.reshape(B, Ho, Wo, NP)[..., :FEAT]                      # real channels

    # ---- zero-padded, row-flattened spatial frame for the fused block ------- #
    hp, wp = Ho + 2, Wo + 2
    s_flat = _round_up(hp * wp, 16)
    a = jnp.pad(y, ((0, 0), (1, 1), (1, 1), (0, 0))).reshape(B, hp * wp, FEAT)
    a = jnp.pad(a, ((0, 0), (0, s_flat - hp * wp), (0, 0)))       # bf16

    ii = jnp.arange(hp)[:, None]
    jj = jnp.arange(wp)[None, :]
    interior = (ii >= 1) & (ii <= Ho) & (jj >= 1) & (jj <= Wo)
    mask = jnp.pad(interior.astype(jnp.float32).reshape(hp * wp, 1),
                   ((0, s_flat - hp * wp), (0, 0)))

    # tap offsets in the flattened frame: tap (di, dj) -> row offset
    offsets = [(di - 1) * wp + (dj - 1) for di in range(3) for dj in range(3)]

    scale1, shift1 = params["b1_bn"]
    scale2, shift2 = params["b2_bn"]
    w1 = _fold_block_weight(params["b1_w"], scale1)               # (9, 32, NP)
    w2 = _fold_block_weight(params["b2_w"], scale2)               # (9, 32, NP)
    eye = jnp.eye(FEAT, NP, dtype=jnp.bfloat16)                   # residual skip

    feat = residual_block_gap(a, mask, w1, _pad_shift(shift1),
                              w2, _pad_shift(shift2), eye, offsets, Ho * Wo)
    return feat[:, :FEAT]


# --------------------------- pure-JAX reference ------------------------------ #

def _reference_forward(x_nchw, params):
    """Plain-JAX f32 reference of the stand-in backbone (fidelity self-check)."""
    x = jnp.transpose(x_nchw, (0, 2, 3, 1)).astype(jnp.float32)
    dn = ("NHWC", "HWIO", "NHWC")

    def conv(v, w, stride):
        return jax.lax.conv_general_dilated(
            v, w, (stride, stride), [(1, 1), (1, 1)], dimension_numbers=dn)

    s0, b0 = params["stem_bn"]
    y = jax.nn.relu(conv(x, params["stem_w"], 2) * s0 + b0)
    s1, b1 = params["b1_bn"]
    h = jax.nn.relu(conv(y, params["b1_w"], 1) * s1 + b1)
    s2, b2 = params["b2_bn"]
    z = conv(h, params["b2_w"], 1) * s2 + b2
    return jnp.mean(jax.nn.relu(z + y), axis=(1, 2))


if __name__ == "__main__":
    key = jax.random.PRNGKey(0)
    pkey, xkey = jax.random.split(key)
    params = init_params(pkey)
    x = jax.random.normal(xkey, (2, 3, 16, 16), jnp.float32)   # NCHW, like PyTorch

    out = jax.block_until_ready(image_encoder_forward(x, params))
    assert out.shape == (2, FEAT) and out.dtype == jnp.float32

    # fidelity check of the bf16 Pallas path against the f32 reference
    ref = _reference_forward(x, params)
    max_err = float(jnp.max(jnp.abs(out - ref)))
    assert jnp.allclose(out, ref, atol=5e-2, rtol=5e-2), f"max_abs_err={max_err}"
    print("KERNEL_OK")
</pallas_src>

<mosaic_0001>
module attributes {stable_mosaic.version = 11 : i64} {
  func.func @_stem_kernel(%arg0: i32, %arg1: memref<128x32xbf16, #tpu.memory_space<vmem>>, %arg2: memref<32x128xbf16, #tpu.memory_space<vmem>>, %arg3: memref<1x128xf32, #tpu.memory_space<vmem>>, %arg4: memref<128x128xbf16, #tpu.memory_space<vmem>>) attributes {dimension_semantics = [#tpu.dimension_semantics<parallel>], iteration_bounds = array<i64: 1>, scalar_prefetch = 0 : i64, scratch_operands = 0 : i64, tpu.core_type = #tpu.core_type<tc>, window_params = [{transform_indices = @transform_0, window_bounds = array<i64: 128, 32>}, {pipeline_mode = #tpu.pipeline_mode<synchronous>, transform_indices = @transform_1, window_bounds = array<i64: 32, 128>}, {pipeline_mode = #tpu.pipeline_mode<synchronous>, transform_indices = @transform_2, window_bounds = array<i64: 1, 128>}, {transform_indices = @transform_3, window_bounds = array<i64: 128, 128>}]} {
    %c0 = arith.constant 0 : index
    %c0_0 = arith.constant 0 : index
    %0 = vector.load %arg1[%c0, %c0_0] : memref<128x32xbf16, #tpu.memory_space<vmem>>, vector<128x32xbf16>
    %c0_1 = arith.constant 0 : index
    %c0_2 = arith.constant 0 : index
    %1 = vector.load %arg2[%c0_1, %c0_2] : memref<32x128xbf16, #tpu.memory_space<vmem>>, vector<32x128xbf16>
    %cst = arith.constant dense<0.000000e+00> : vector<128x128xf32>
    %2 = tpu.matmul %0, %1, %cst {dimension_numbers = #tpu.dot_dimension_numbers<[1], [0], [0], [1], [0, 0, 1, 1], [], []>} : vector<128x32xbf16>, vector<32x128xbf16>, vector<128x128xf32> -> vector<128x128xf32>
    %c0_3 = arith.constant 0 : index
    %c0_4 = arith.constant 0 : index
    %3 = vector.load %arg3[%c0_3, %c0_4] : memref<1x128xf32, #tpu.memory_space<vmem>>, vector<1x128xf32>
    %4 = vector.broadcast %3 : vector<1x128xf32> to vector<128x128xf32>
    %5 = arith.addf %2, %4 : vector<128x128xf32>
    %cst_5 = arith.constant 0.000000e+00 : f32
    %6 = vector.broadcast %cst_5 : f32 to vector<128x128xf32>
    %7 = arith.maximumf %5, %6 : vector<128x128xf32>
    %8 = arith.truncf %7 : vector<128x128xf32> to vector<128x128xbf16>
    %c0_6 = arith.constant 0 : index
    %c0_7 = arith.constant 0 : index
    %9 = vector.load %arg4[%c0_6, %c0_7] : memref<128x128xbf16, #tpu.memory_space<vmem>>, vector<128x128xbf16>
    tpu.vector_store %arg4[%c0_6, %c0_7], %8 {strides = array<i32>} : memref<128x128xbf16, #tpu.memory_space<vmem>>, vector<128x128xbf16>,
    return
  }
  func.func @transform_0(%arg0: i32) -> (i32, i32) {
    %c0_i32 = arith.constant 0 : i32
    %c0_i32_0 = arith.constant 0 : i32
    return %arg0, %c0_i32 : i32, i32
  }
  func.func @transform_1(%arg0: i32) -> (i32, i32) {
    %c0_i32 = arith.constant 0 : i32
    %c0_i32_0 = arith.constant 0 : i32
    %c0_i32_1 = arith.constant 0 : i32
    return %c0_i32, %c0_i32_0 : i32, i32
  }
  func.func @transform_2(%arg0: i32) -> (i32, i32) {
    %c0_i32 = arith.constant 0 : i32
    %c0_i32_0 = arith.constant 0 : i32
    %c0_i32_1 = arith.constant 0 : i32
    return %c0_i32, %c0_i32_0 : i32, i32
  }
  func.func @transform_3(%arg0: i32) -> (i32, i32) {
    %c0_i32 = arith.constant 0 : i32
    %c0_i32_0 = arith.constant 0 : i32
    return %arg0, %c0_i32 : i32, i32
  }
}

</mosaic_0001>

<bundles_post_ra>
// kernel: tpu_custom_call.1
= control target key start
LH: loop header
LB: loop body
LE: loop exit
PB: predicated region body
PF: predicated region fallthrough
CT: control target
= control target key end

     0   :  { %vm95_vm0 = vcmask 261120   ;;  %s574_s0 = inlined_call_operand.vmem [shape: bf16[128,32], index: 0, kind: input, shape index: {}]   ;;  %s575_s1 = inlined_call_operand.vmem [shape: bf16[32,128], index: 1, kind: input, shape index: {}]   ;;  %s576_s2 = inlined_call_operand.vmem [shape: f32[1,128], index: 2, kind: input, shape index: {}]   ;;  %s577_s3 = inlined_call_operand.hbm [shape: bf16[128,128], index: 3, kind: output, shape index: {}]  }
   0x1   :  { %v464_v0 = vld [vmem:[%s575_s1] sm:$0xff]   ;;  %v465_v1 = vld [vmem:[%s575_s1 + $0x8] sm:$0xff]   ;;  %v470_v6 = vld [vmem:[%s574_s0 + $0x10] sm:$0xff]  }
   0x2   :  { %437 = vmatprep.subr.bf16.mxu0 %v464_v0  ;;  %457 = vmatprep.subr.bf16.mxu1 %v464_v0  ;;  %v466_v2 = vld [vmem:[%s574_s0] sm:$0xff]   ;;  %v468_v4 = vld [vmem:[%s574_s0 + $0x8] sm:$0xff]   ;;  %v471_v7 = vld [vmem:[%s574_s0 + $0x30] sm:$0xff]  }
   0x3   :  { %438 = vmatpush3.bf16.msra.mxu0 %v464_v0  ;;  %459 = vmatpush3.bf16.msra.mxu1 %v464_v0  ;;  %v467_v3 = vld [vmem:[%s574_s0 + $0x20] sm:$0xff]   ;;  %v469_v5 = vld [vmem:[%s574_s0 + $0x28] sm:$0xff]  }
   0x4   :  { %439 = vmatprep.subr.bf16.mxu0 %v465_v1  ;;  %458 = vmatprep.subr.bf16.mxu1 %v465_v1 }
   0x5   :  { %441 = vmatprep.mubr.msk.bf16.mxu0 %vm95_vm0, %v466_v2  ;;  %449 = vmatprep.mubr.msk.bf16.mxu1 %vm95_vm0, %v467_v3 }
   0x7   :  { %440 = vmatpush3.bf16.msra.mxu0 %v465_v1  ;;  %460 = vmatpush3.bf16.msra.mxu1 %v465_v1 }
   0xa   :  { %442 = vmatmul.mubr.msk.bf16.vlgmr.msra.gmra.mrb[0].mxu0 %vm95_vm0, %v468_v4  ;;  %450 = vmatmul.mubr.msk.bf16.vlgmr.msra.gmra.mrb[0].mxu1 %vm95_vm0, %v469_v5 }
   0xb   :  { %8 = vsyncpa [#allocation3], 0  ;;  %445 = vmatprep.mubr.msk.bf16.mxu0 %vm95_vm0, %v470_v6  ;;  %453 = vmatprep.mubr.msk.bf16.mxu1 %vm95_vm0, %v471_v7  ;;  %v472_v8 = vld [vmem:[%s574_s0 + $0x18] sm:$0xff]   ;;  %v329_v10 = vld [vmem:[%s576_s2] ss:$0 sm:$0xff] }
   0xc   :  { %v473_v9 = vld [vmem:[%s574_s0 + $0x38] sm:$0xff]   ;;  %s498_s0 = smov [#allocation2]  }
   0xd   :  { %s318_s2 = sshll.u32 %s498_s0, 4  ;;  %s319_s2 = int_to_ptr.vmem [resolvable:$true] %s318_s2 }
   0xe   :  { %s474_s6 = scalar_lea.vmem %s319_s2, 1024  ;;  %p479_p1 = scmp.lt.s32.totalorder %s319_s2, %s319_s2 }
   0xf   :  { %p475_p0 = scmp.ne.s32.totalorder %s319_s2, %s474_s6  ;;  %p480_p2 = scmp.lt.s32.totalorder %s474_s6, %s474_s6 }
  0x11   :  { %p481_p3 = por %p480_p2, %p479_p1 }
  0x12   :  { %446 = vmatmul.mubr.msk.bf16.gmra.mrb[4].mxu0 %vm95_vm0, %v472_v8  ;;  %454 = vmatmul.mubr.msk.bf16.gmra.mrb[4].mxu1 %vm95_vm0, %v473_v9 }
  0x13   :  { %p482_p4 = pnand %p481_p3, %p475_p0 }
  0xdd   :  { %v443_v11 = vpop.f32.mrb[0].mxu0  ;;  %v451_v12 = vpop.f32.mrb[0].mxu1 }
  0xde   :  { %v163_v13 = vadd.f32 %v443_v11, %v329_v10  ;;  %v195_v14 = vadd.f32 %v451_v12, %v329_v10  ;;  %v154_v15 = vpop.f32.mrb[1].mxu0  ;;  %v186_v16 = vpop.f32.mrb[1].mxu1 }
  0xdf   :  { %v155_v17 = vadd.f32 %v329_v10, %v154_v15  ;;  %v187_v18 = vadd.f32 %v329_v10, %v186_v16  ;;  %v444_v19 = vpop.f32.mrb[2].mxu0  ;;  %v452_v20 = vpop.f32.mrb[2].mxu1 }
  0xe0   :  { %v166_v21 = vadd.f32 %v444_v19, %v329_v10  ;;  %v198_v22 = vadd.f32 %v452_v20, %v329_v10  ;;  %v157_v23 = vpop.f32.mrb[3].mxu0  ;;  %v189_v24 = vpop.f32.mrb[3].mxu1  ;;  %v219_v27 = vmax.f32 %v163_v13, 0.0  ;;  %v227_v28 = vmax.f32 %v195_v14, 0.0 }
  0xe1   :  { %v158_v25 = vadd.f32 %v329_v10, %v157_v23  ;;  %v190_v26 = vadd.f32 %v329_v10, %v189_v24  ;;  %v217_v31 = vmax.f32 %v155_v17, 0.0  ;;  %v225_v32 = vmax.f32 %v187_v18, 0.0 }
  0xe2   :  { %v220_v29 = vmax.f32 %v166_v21, 0.0  ;;  %v228_v30 = vmax.f32 %v198_v22, 0.0 }
  0xe3   :  { %v218_v33 = vmax.f32 %v158_v25, 0.0  ;;  %v226_v34 = vmax.f32 %v190_v26, 0.0 }
  0xe4   :  { %v388_v35 = vpack.c.bf16 %v220_v29, %v219_v27  ;;  %v408_v36 = vpack.c.bf16 %v228_v30, %v227_v28 }
  0xe5   :  { %v383_v37 = vpack.c.bf16 %v218_v33, %v217_v31  ;;  %v403_v38 = vpack.c.bf16 %v226_v34, %v225_v32  ;;  %v447_v39 = vpop.f32.mrb[4].mxu0  ;;  %v455_v40 = vpop.f32.mrb[4].mxu1 }
  0xe6   :  { %420 = vst [vmem:[#allocation2 + $0x8] sm:$0xff] %v388_v35   ;;  %424 = vst [vmem:[#allocation2 + $0x28] sm:$0xff] %v408_v36   ;;  %v179_v41 = vadd.f32 %v447_v39, %v329_v10  ;;  %v211_v42 = vadd.f32 %v455_v40, %v329_v10  ;;  %v170_v43 = vpop.f32.mrb[5].mxu0  ;;  %v202_v44 = vpop.f32.mrb[5].mxu1 }
  0xe7   :  { %384 = vst [vmem:[#allocation2] sm:$0xff] %v383_v37   ;;  %423 = vst [vmem:[#allocation2 + $0x20] sm:$0xff] %v403_v38   ;;  %v171_v45 = vadd.f32 %v329_v10, %v170_v43  ;;  %v203_v46 = vadd.f32 %v329_v10, %v202_v44  ;;  %v448_v47 = vpop.f32.mrb[6].mxu0  ;;  %v456_v48 = vpop.f32.mrb[6].mxu1 }
  0xe8   :  { %v182_v49 = vadd.f32 %v448_v47, %v329_v10  ;;  %v214_v50 = vadd.f32 %v456_v48, %v329_v10  ;;  %v173_v51 = vpop.f32.mrb[7].mxu0  ;;  %v205_v52 = vpop.f32.mrb[7].mxu1  ;;  %v223_v55 = vmax.f32 %v179_v41, 0.0  ;;  %v231_v56 = vmax.f32 %v211_v42, 0.0 }
  0xe9   :  { %v174_v53 = vadd.f32 %v329_v10, %v173_v51  ;;  %v206_v54 = vadd.f32 %v329_v10, %v205_v52  ;;  %v221_v59 = vmax.f32 %v171_v45, 0.0  ;;  %v229_v60 = vmax.f32 %v203_v46, 0.0 }
  0xea   :  { %v224_v57 = vmax.f32 %v182_v49, 0.0  ;;  %v232_v58 = vmax.f32 %v214_v50, 0.0 }
  0xeb   :  { %v222_v61 = vmax.f32 %v174_v53, 0.0  ;;  %v230_v62 = vmax.f32 %v206_v54, 0.0 }
  0xec   :  { %v398_v63 = vpack.c.bf16 %v224_v57, %v223_v55  ;;  %v418_v0 = vpack.c.bf16 %v232_v58, %v231_v56 }
  0xed   :  { %v393_v1 = vpack.c.bf16 %v222_v61, %v221_v59  ;;  %v413_v2 = vpack.c.bf16 %v230_v62, %v229_v60 }
  0xee   :  { %422 = vst [vmem:[#allocation2 + $0x18] sm:$0xff] %v398_v63   ;;  %426 = vst [vmem:[#allocation2 + $0x38] sm:$0xff] %v418_v0  }
  0xef   :  { %421 = vst [vmem:[#allocation2 + $0x10] sm:$0xff] %v393_v1   ;;  %425 = vst [vmem:[#allocation2 + $0x30] sm:$0xff] %v413_v2  }
  0xf0   :  { %485 = shalt.err (!%p482_p4)
}
  0xf1   :  { %s486_s9 = scalar_lea.hbm %s577_s3, 1024 }
  0xf2   :  { %p487_p5 = scmp.ne.s32.totalorder %s577_s3, %s486_s9  ;;  %p490_p6 = scmp.lt.u32.totalorder %s486_s9, %s577_s3 }
  0xf4   :  { %p492_p7 = pnand %p490_p6, %p487_p5 }
  0xf6   :  { %495 = shalt.err (!%p492_p7)
}
  0xf7   :  { %s499_s14 = smov 64   ;;  %s500_s15 = smov 4  }
  0xf8   :  { %324 = dma.vmem_to_hbm [thread:$0]  %s319_s2, 1024, %s577_s3, [#allocation3], %s499_s14, %s499_s14, %s500_s15  }
  0xf9   :  { %496 = dma.done.wait [#allocation3], 1024  }
  0xfa   :  { %497 = vsyncadd [#allocation3], 4294966272 }
  0xfb   :  { %328 = vsyncpa [#allocation3], 1 }

</bundles_post_ra>
